<compile_context>
chip_gen: v7x
topology: tpu7x:2x2x1
jax: 0.10.0
libtpu: 0.0.40
codegen_flags: <defaults>
</compile_context>

<pallas_src>
import functools
import math

import jax
import jax.numpy as jnp
from jax.experimental import pallas as pl
from jax.experimental.pallas import tpu as pltpu

SUBLANE = 8


def _mlp_readout_kernel(*refs, num_hidden, operand_dtype):
    # refs = (x_ref, w_0..w_L refs, a_ref, o_ref)
    x_ref = refs[0]
    w_refs = refs[1:2 + num_hidden]
    a_ref = refs[2 + num_hidden]
    o_ref = refs[3 + num_hidden]

    a = a_ref[0, 0]                        # shared PReLU slope (scalar, SMEM)
    y = x_ref[...].astype(jnp.float32)     # (TM, d_in) activation tile

    # Hidden layers: y = prelu(y @ W_l)  (weights already (in, out): no .T).
    # MXU operands in bf16, accumulation + PReLU in f32.
    for l in range(num_hidden):
        y = jnp.dot(y.astype(operand_dtype), w_refs[l][...],
                    preferred_element_type=jnp.float32)
        y = jnp.where(y > 0, y, a * y)

    # Final projection, no activation.
    out = jnp.dot(y.astype(operand_dtype), w_refs[num_hidden][...],
                  preferred_element_type=jnp.float32)
    o_ref[...] = out.astype(o_ref.dtype)


def mlp_readout(x, weights, prelu_a, *, block_rows=512,
                operand_dtype=jnp.bfloat16):
    """x: (N, input_dim) f32.  weights: list of L+1 arrays in PyTorch layout
    (out_features, in_features), bias-free.  prelu_a: scalar PReLU slope."""
    N, d_in = x.shape
    L = len(weights) - 1
    d_out = weights[-1].shape[0]
    assert weights[0].shape[1] == d_in
    assert block_rows % SUBLANE == 0

    # Pre-transpose weights once to (in, out) and cast to the MXU operand
    # dtype.  True (tiny) shapes: full-dim blocks need no (8,128) padding.
    w_t = [jnp.asarray(w, jnp.float32).T.astype(operand_dtype)
           for w in weights]

    # Row tiling: one grid step for small N (single-TC friendly), 512-row
    # tiles otherwise; Pallas partial edge blocks handle N % tm != 0 (rows are
    # independent, OOB output rows are masked on store).
    if N <= block_rows:
        tm = N                       # block dim == full array dim: always legal
    else:
        tm = block_rows              # multiple of 8
    grid = (pl.cdiv(N, tm),)

    a_arr = jnp.asarray(prelu_a, jnp.float32).reshape(1, 1)

    in_specs = (
        [pl.BlockSpec((tm, d_in), lambda i: (i, 0))]
        + [pl.BlockSpec(w.shape, lambda i: (0, 0)) for w in w_t]
        + [pl.BlockSpec(memory_space=pltpu.MemorySpace.SMEM)]
    )
    out_spec = pl.BlockSpec((tm, d_out), lambda i: (i, 0))

    kernel = functools.partial(_mlp_readout_kernel, num_hidden=L,
                               operand_dtype=operand_dtype)

    return pl.pallas_call(
        kernel,
        out_shape=jax.ShapeDtypeStruct((N, d_out), jnp.float32),
        grid_spec=pltpu.PrefetchScalarGridSpec(
            num_scalar_prefetch=0,
            grid=grid,
            in_specs=in_specs,
            out_specs=out_spec,
        ),
        compiler_params=pltpu.CompilerParams(
            dimension_semantics=("parallel",),
            # Footprint ~2 * tm * (d_in + d_out) * 4 B + weights  <<  1 MiB;
            # 16 MiB is within every generation's default scoped-VMEM budget.
            vmem_limit_bytes=16 * 1024 * 1024,
        ),
    )(x, *w_t, a_arr)


def init_params(key, input_dim, output_dim, L):
    """Deterministic init mimicking nn.Linear defaults (uniform +-1/sqrt(fan_in))."""
    dims = [input_dim // (2 ** l) for l in range(L + 1)] + [output_dim]
    keys = jax.random.split(key, L + 1)
    weights = []
    for l in range(L + 1):
        fan_in, fan_out = dims[l], dims[l + 1]
        bound = 1.0 / math.sqrt(fan_in)
        weights.append(jax.random.uniform(keys[l], (fan_out, fan_in),
                                          jnp.float32, -bound, bound))
    prelu_a = jnp.float32(0.25)           # nn.PReLU() default
    return weights, prelu_a


def reference_f32(x, weights, prelu_a):
    """Pure-JAX f32 reference of the PyTorch forward."""
    y = x
    L = len(weights) - 1
    for l in range(L):
        y = y @ weights[l].T
        y = jnp.where(y > 0, y, prelu_a * y)
    return y @ weights[L].T


def reference_matched(x, weights, prelu_a, operand_dtype=jnp.bfloat16):
    """Reference with the same bf16-operand / f32-accumulate math as the kernel."""
    y = x.astype(jnp.float32)
    L = len(weights) - 1
    for l in range(L):
        y = jnp.dot(y.astype(operand_dtype), weights[l].T.astype(operand_dtype),
                    preferred_element_type=jnp.float32)
        y = jnp.where(y > 0, y, prelu_a * y)
    return jnp.dot(y.astype(operand_dtype), weights[L].T.astype(operand_dtype),
                   preferred_element_type=jnp.float32)


if __name__ == "__main__":
    input_dim, output_dim, L = 32, 10, 2
    n_rows = 256                           # e.g. node embeddings fed to readout

    key = jax.random.PRNGKey(0)
    kx, kw = jax.random.split(key)
    x = jax.random.normal(kx, (n_rows, input_dim), jnp.float32)
    weights, prelu_a = init_params(kw, input_dim, output_dim, L)

    out = mlp_readout(x, weights, prelu_a)
    out = jax.block_until_ready(out)
    assert out.shape == (n_rows, output_dim)

    # Tight check vs a reference that uses the same bf16-operand math.
    ref_m = reference_matched(x, weights, prelu_a)
    assert jnp.allclose(out, ref_m, atol=2e-3, rtol=2e-3), \
        "mismatch vs bf16-matched reference"

    # Loose check vs the pure-f32 PyTorch-equivalent reference.
    ref_f = reference_f32(x, weights, prelu_a)
    assert jnp.allclose(out, ref_f, atol=5e-2, rtol=5e-2), \
        "mismatch vs f32 reference"

    print("KERNEL_OK")
</pallas_src>

<mosaic_0001>
module attributes {stable_mosaic.version = 11 : i64} {
  func.func @_mlp_readout_kernel(%arg0: i32, %arg1: memref<256x32xf32, #tpu.memory_space<vmem>>, %arg2: memref<32x16xbf16, #tpu.memory_space<vmem>>, %arg3: memref<16x8xbf16, #tpu.memory_space<vmem>>, %arg4: memref<8x10xbf16, #tpu.memory_space<vmem>>, %arg5: memref<1x1xf32, #tpu.memory_space<smem>>, %arg6: memref<256x10xf32, #tpu.memory_space<vmem>>) attributes {dimension_semantics = [#tpu.dimension_semantics<parallel>], iteration_bounds = array<i64: 1>, scalar_prefetch = 0 : i64, scratch_operands = 0 : i64, tpu.core_type = #tpu.core_type<tc>, window_params = [{transform_indices = @transform_0, window_bounds = array<i64: 256, 32>}, {pipeline_mode = #tpu.pipeline_mode<synchronous>, transform_indices = @transform_1, window_bounds = array<i64: 32, 16>}, {pipeline_mode = #tpu.pipeline_mode<synchronous>, transform_indices = @transform_2, window_bounds = array<i64: 16, 8>}, {pipeline_mode = #tpu.pipeline_mode<synchronous>, transform_indices = @transform_3, window_bounds = array<i64: 8, 10>}, {transform_indices = @transform_4, window_bounds = array<i64: 1, 1>}, {transform_indices = @transform_5, window_bounds = array<i64: 256, 10>}]} {
    %c0 = arith.constant 0 : index
    %c0_0 = arith.constant 0 : index
    %0 = memref.load %arg5[%c0, %c0_0] : memref<1x1xf32, #tpu.memory_space<smem>>
    %c0_1 = arith.constant 0 : index
    %c0_2 = arith.constant 0 : index
    %1 = vector.load %arg1[%c0_1, %c0_2] : memref<256x32xf32, #tpu.memory_space<vmem>>, vector<256x32xf32>
    %2 = arith.truncf %1 : vector<256x32xf32> to vector<256x32xbf16>
    %c0_3 = arith.constant 0 : index
    %c0_4 = arith.constant 0 : index
    %3 = vector.load %arg2[%c0_3, %c0_4] : memref<32x16xbf16, #tpu.memory_space<vmem>>, vector<32x16xbf16>
    %cst = arith.constant dense<0.000000e+00> : vector<256x16xf32>
    %4 = tpu.matmul %2, %3, %cst {dimension_numbers = #tpu.dot_dimension_numbers<[1], [0], [0], [1], [0, 0, 1, 1], [], []>} : vector<256x32xbf16>, vector<32x16xbf16>, vector<256x16xf32> -> vector<256x16xf32>
    %cst_5 = arith.constant 0.000000e+00 : f32
    %5 = vector.broadcast %cst_5 : f32 to vector<256x16xf32>
    %6 = arith.cmpf ogt, %4, %5 : vector<256x16xf32>
    %7 = vector.broadcast %0 : f32 to vector<256x16xf32>
    %8 = arith.mulf %7, %4 : vector<256x16xf32>
    %9 = arith.select %6, %4, %8 : vector<256x16xi1>, vector<256x16xf32>
    %10 = arith.truncf %9 : vector<256x16xf32> to vector<256x16xbf16>
    %c0_6 = arith.constant 0 : index
    %c0_7 = arith.constant 0 : index
    %11 = vector.load %arg3[%c0_6, %c0_7] : memref<16x8xbf16, #tpu.memory_space<vmem>>, vector<16x8xbf16>
    %cst_8 = arith.constant dense<0.000000e+00> : vector<256x8xf32>
    %12 = tpu.matmul %10, %11, %cst_8 {dimension_numbers = #tpu.dot_dimension_numbers<[1], [0], [0], [1], [0, 0, 1, 1], [], []>} : vector<256x16xbf16>, vector<16x8xbf16>, vector<256x8xf32> -> vector<256x8xf32>
    %cst_9 = arith.constant 0.000000e+00 : f32
    %13 = vector.broadcast %cst_9 : f32 to vector<256x8xf32>
    %14 = arith.cmpf ogt, %12, %13 : vector<256x8xf32>
    %15 = vector.broadcast %0 : f32 to vector<256x8xf32>
    %16 = arith.mulf %15, %12 : vector<256x8xf32>
    %17 = arith.select %14, %12, %16 : vector<256x8xi1>, vector<256x8xf32>
    %18 = arith.truncf %17 : vector<256x8xf32> to vector<256x8xbf16>
    %c0_10 = arith.constant 0 : index
    %c0_11 = arith.constant 0 : index
    %19 = vector.load %arg4[%c0_10, %c0_11] : memref<8x10xbf16, #tpu.memory_space<vmem>>, vector<8x10xbf16>
    %cst_12 = arith.constant dense<0.000000e+00> : vector<256x10xf32>
    %20 = tpu.matmul %18, %19, %cst_12 {dimension_numbers = #tpu.dot_dimension_numbers<[1], [0], [0], [1], [0, 0, 1, 1], [], []>} : vector<256x8xbf16>, vector<8x10xbf16>, vector<256x10xf32> -> vector<256x10xf32>
    %c0_13 = arith.constant 0 : index
    %c0_14 = arith.constant 0 : index
    %21 = vector.load %arg6[%c0_13, %c0_14] : memref<256x10xf32, #tpu.memory_space<vmem>>, vector<256x10xf32>
    tpu.vector_store %arg6[%c0_13, %c0_14], %20 {strides = array<i32>} : memref<256x10xf32, #tpu.memory_space<vmem>>, vector<256x10xf32>,
    return
  }
  func.func @transform_0(%arg0: i32) -> (i32, i32) {
    %c0_i32 = arith.constant 0 : i32
    %c0_i32_0 = arith.constant 0 : i32
    return %arg0, %c0_i32 : i32, i32
  }
  func.func @transform_1(%arg0: i32) -> (i32, i32) {
    %c0_i32 = arith.constant 0 : i32
    %c0_i32_0 = arith.constant 0 : i32
    %c0_i32_1 = arith.constant 0 : i32
    return %c0_i32, %c0_i32_0 : i32, i32
  }
  func.func @transform_2(%arg0: i32) -> (i32, i32) {
    %c0_i32 = arith.constant 0 : i32
    %c0_i32_0 = arith.constant 0 : i32
    %c0_i32_1 = arith.constant 0 : i32
    return %c0_i32, %c0_i32_0 : i32, i32
  }
  func.func @transform_3(%arg0: i32) -> (i32, i32) {
    %c0_i32 = arith.constant 0 : i32
    %c0_i32_0 = arith.constant 0 : i32
    %c0_i32_1 = arith.constant 0 : i32
    return %c0_i32, %c0_i32_0 : i32, i32
  }
  func.func @transform_4(%arg0: i32) -> (i32, i32) {
    %c0_i32 = arith.constant 0 : i32
    %c0_i32_0 = arith.constant 0 : i32
    %c0_i32_1 = arith.constant 0 : i32
    return %c0_i32, %c0_i32_0 : i32, i32
  }
  func.func @transform_5(%arg0: i32) -> (i32, i32) {
    %c0_i32 = arith.constant 0 : i32
    %c0_i32_0 = arith.constant 0 : i32
    return %arg0, %c0_i32 : i32, i32
  }
}

</mosaic_0001>

<bundles_post_ra>
// kernel: tpu_custom_call.1
= control target key start
LH: loop header
LB: loop body
LE: loop exit
PB: predicated region body
PF: predicated region fallthrough
CT: control target
= control target key end

     0   :  { %vm87_vm0 = vcmask 261120   ;;  %vm790_vm1 = vcmask 1043456   ;;  %vm418_vm6 = vcmask 130048   ;;  %s1591_s1 = inlined_call_operand.vmem [shape: bf16[32,16], index: 1, kind: input, shape index: {}]   ;;  %s1592_s0 = inlined_call_operand.vmem [shape: f32[256,32], index: 0, kind: input, shape index: {}]   ;;  %s1593_s2 = inlined_call_operand.vmem [shape: bf16[16,8], index: 2, kind: input, shape index: {}]   ;;  %s1594_s3 = inlined_call_operand.vmem [shape: bf16[8,10], index: 3, kind: input, shape index: {}]   ;;  %s1595_s4 = inlined_call_operand.<no memory space> [shape: f32[1,1], index: 4, kind: input, shape index: {}]   ;;  %s1596_s5 = inlined_call_operand.vmem [shape: f32[256,10], index: 5, kind: output, shape index: {}]  }
   0x1   :  { %v1202_v0 = vld [vmem:[%s1591_s1] sm:$0xff]   ;;  %v1203_v1 = vld [vmem:[%s1591_s1 + $0x8] sm:$0xff]   ;;  %v25_v5 = vld [vmem:[%s1592_s0 + $0x10] sm:$0xff]  ;;  %v1364_v53 = vstv %s1595_s4 }
   0x2   :  { %1095 = vmatprep.subr.bf16.mxu0 %v1202_v0  ;;  %v23_v2 = vld [vmem:[%s1592_s0] sm:$0xff]  ;;  %v24_v3 = vld [vmem:[%s1592_s0 + $0x8] sm:$0xff]  ;;  %v26_v6 = vld [vmem:[%s1592_s0 + $0x18] sm:$0xff] }
   0x3   :  { %1096 = vmatpush3.bf16.msra.mxu0 %v1202_v0  ;;  %v55_v4 = vpack.c.bf16 %v24_v3, %v23_v2  ;;  %v27_v7 = vld [vmem:[%s1592_s0 + $0x20] sm:$0xff]  ;;  %v28_v8 = vld [vmem:[%s1592_s0 + $0x28] sm:$0xff]  ;;  %v56_v9 = vpack.c.bf16 %v26_v6, %v25_v5  ;;  %v29_v11 = vld [vmem:[%s1592_s0 + $0x30] sm:$0xff] }
   0x4   :  { %1097 = vmatprep.subr.bf16.mxu0 %v1203_v1  ;;  %v57_v10 = vpack.c.bf16 %v28_v8, %v27_v7  ;;  %v30_v12 = vld [vmem:[%s1592_s0 + $0x38] sm:$0xff]  ;;  %v31_v13 = vld [vmem:[%s1592_s0 + $0x40] sm:$0xff]  ;;  %v32_v14 = vld [vmem:[%s1592_s0 + $0x48] sm:$0xff] }
   0x5   :  { %1099 = vmatprep.mubr.msk.bf16.mxu0 %vm87_vm0, %v55_v4  ;;  %v1204_v15 = vld [vmem:[%s1593_s2] sm:$0xff]   ;;  %v58_v16 = vpack.c.bf16 %v30_v12, %v29_v11  ;;  %v59_v17 = vpack.c.bf16 %v32_v14, %v31_v13  ;;  %v33_v18 = vld [vmem:[%s1592_s0 + $0x50] sm:$0xff]  ;;  %v34_v19 = vld [vmem:[%s1592_s0 + $0x58] sm:$0xff] }
   0x6   :  { %1199 = vmatprep.subr.bf16.mxu1 %v1204_v15  ;;  %v35_v20 = vld [vmem:[%s1592_s0 + $0x60] sm:$0xff]  ;;  %v36_v21 = vld [vmem:[%s1592_s0 + $0x68] sm:$0xff]  ;;  %v60_v22 = vpack.c.bf16 %v34_v19, %v33_v18  ;;  %v37_v24 = vld [vmem:[%s1592_s0 + $0x70] sm:$0xff] }
   0x7   :  { %1098 = vmatpush3.bf16.msra.mxu0 %v1203_v1  ;;  %1200 = vmatpush3.bf16.msra.mxu1 %v1204_v15  ;;  %v61_v23 = vpack.c.bf16 %v36_v21, %v35_v20  ;;  %v38_v25 = vld [vmem:[%s1592_s0 + $0x78] sm:$0xff]  ;;  %v39_v26 = vld [vmem:[%s1592_s0 + $0x80] sm:$0xff]  ;;  %v40_v27 = vld [vmem:[%s1592_s0 + $0x88] sm:$0xff] }
   0x8   :  { %1131 = vmatprep.subr.bf16.mxu0 %v1204_v15  ;;  %v62_v28 = vpack.c.bf16 %v38_v25, %v37_v24  ;;  %v63_v29 = vpack.c.bf16 %v40_v27, %v39_v26  ;;  %v41_v30 = vld [vmem:[%s1592_s0 + $0x90] sm:$0xff]  ;;  %v42_v31 = vld [vmem:[%s1592_s0 + $0x98] sm:$0xff]  ;;  %v43_v32 = vld [vmem:[%s1592_s0 + $0xa0] sm:$0xff] }
   0x9   :  { %v44_v33 = vld [vmem:[%s1592_s0 + $0xa8] sm:$0xff]  ;;  %v64_v34 = vpack.c.bf16 %v42_v31, %v41_v30  ;;  %v45_v36 = vld [vmem:[%s1592_s0 + $0xb0] sm:$0xff]  ;;  %v46_v37 = vld [vmem:[%s1592_s0 + $0xb8] sm:$0xff] }
   0xa   :  { %1100 = vmatmul.mubr.msk.bf16.vlgmr.msra.gmra.mrb[0].mxu0 %vm87_vm0, %v56_v9  ;;  %v65_v35 = vpack.c.bf16 %v44_v33, %v43_v32  ;;  %v47_v38 = vld [vmem:[%s1592_s0 + $0xc0] sm:$0xff]  ;;  %v48_v39 = vld [vmem:[%s1592_s0 + $0xc8] sm:$0xff]  ;;  %v66_v40 = vpack.c.bf16 %v46_v37, %v45_v36  ;;  %v49_v42 = vld [vmem:[%s1592_s0 + $0xd0] sm:$0xff] }
   0xb   :  { %1103 = vmatprep.mubr.msk.bf16.mxu0 %vm87_vm0, %v57_v10  ;;  %1132 = vmatpush3.bf16.msra.mxu0 %v1204_v15  ;;  %v67_v41 = vpack.c.bf16 %v48_v39, %v47_v38  ;;  %v50_v43 = vld [vmem:[%s1592_s0 + $0xd8] sm:$0xff]  ;;  %v51_v44 = vld [vmem:[%s1592_s0 + $0xe0] sm:$0xff]  ;;  %v52_v45 = vld [vmem:[%s1592_s0 + $0xe8] sm:$0xff] }
   0xc   :  { %v68_v46 = vpack.c.bf16 %v50_v43, %v49_v42  ;;  %v69_v47 = vpack.c.bf16 %v52_v45, %v51_v44  ;;  %v53_v48 = vld [vmem:[%s1592_s0 + $0xf0] sm:$0xff]  ;;  %v54_v49 = vld [vmem:[%s1592_s0 + $0xf8] sm:$0xff]  ;;  %v740_v51 = vld [vmem:[%s1594_s3] sm:$0xf] }
   0xd   :  { %v70_v50 = vpack.c.bf16 %v54_v49, %v53_v48  ;;  %1201 = vmatprep.subr.msk.bf16.mxu1 %vm790_vm1, %v740_v51  ;;  %v1359_v52 = vsel %vm790_vm1, %v740_v51, 0 }
  0x12   :  { %1104 = vmatmul.mubr.msk.bf16.gmra.mrb[4].mxu0 %vm87_vm0, %v58_v16 }
  0x13   :  { %1107 = vmatprep.mubr.msk.bf16.mxu0 %vm87_vm0, %v59_v17 }
  0x1a   :  { %1108 = vmatmul.mubr.msk.bf16.gmra.mrb[8].mxu0 %vm87_vm0, %v60_v22 }
  0x1b   :  { %1111 = vmatprep.mubr.msk.bf16.mxu0 %vm87_vm0, %v61_v23 }
  0x22   :  { %1112 = vmatmul.mubr.msk.bf16.gmra.mrb[12].mxu0 %vm87_vm0, %v62_v28 }
  0x23   :  { %1115 = vmatprep.mubr.msk.bf16.mxu0 %vm87_vm0, %v63_v29 }
  0x2a   :  { %1116 = vmatmul.mubr.msk.bf16.gmra.mrb[16].mxu0 %vm87_vm0, %v64_v34 }
  0x2b   :  { %1119 = vmatprep.mubr.msk.bf16.mxu0 %vm87_vm0, %v65_v35 }
  0x32   :  { %1120 = vmatmul.mubr.msk.bf16.gmra.mrb[20].mxu0 %vm87_vm0, %v66_v40 }
  0x33   :  { %1123 = vmatprep.mubr.msk.bf16.mxu0 %vm87_vm0, %v67_v41 }
  0x3a   :  { %1124 = vmatmul.mubr.msk.bf16.gmra.mrb[24].mxu0 %vm87_vm0, %v68_v46 }
  0x3b   :  { %1127 = vmatprep.mubr.msk.bf16.mxu0 %vm87_vm0, %v69_v47 }
  0x42   :  { %1128 = vmatmul.mubr.msk.bf16.gmra.mrb[28].mxu0 %vm87_vm0, %v70_v50 }
  0xdd   :  { %v1101_v54 = vpop.f32.mrb[0].mxu0 }
  0xde   :  { %v332_v55 = vmul.f32 %v1101_v54, %v1364_v53  ;;  %v170_v56 = vpop.f32.mrb[1].mxu0  ;;  %vm299_vm2 = vcmp.gt.f32.partialorder %v1101_v54, 0.0 }
  0xdf   :  { %v330_v57 = vmul.f32 %v1364_v53, %v170_v56  ;;  %v1102_v58 = vpop.f32.mrb[2].mxu0  ;;  %vm297_vm3 = vcmp.gt.f32.partialorder %v170_v56, 0.0 }
  0xe0   :  { %vm300_vm4 = vcmp.gt.f32.partialorder %v1102_v58, 0.0  ;;  %v333_v59 = vmul.f32 %v1102_v58, %v1364_v53  ;;  %v173_v60 = vpop.f32.mrb[3].mxu0  ;;  %v364_v62 = vsel %vm299_vm2, %v1101_v54, %v332_v55 }
  0xe1   :  { %vm298_vm5 = vcmp.gt.f32.partialorder %v173_v60, 0.0  ;;  %v331_v61 = vmul.f32 %v1364_v53, %v173_v60  ;;  %v362_v0 = vsel %vm297_vm3, %v170_v56, %v330_v57 }
  0xe2   :  { %v365_v63 = vsel %vm300_vm4, %v1102_v58, %v333_v59 }
  0xe3   :  { %v395_v1 = vpack.c.bf16 %v365_v63, %v364_v62  ;;  %v363_v2 = vsel %vm298_vm5, %v173_v60, %v331_v61 }
  0xe4   :  { %v394_v3 = vpack.c.bf16 %v363_v2, %v362_v0 }
  0xe5   :  { %v1105_v4 = vpop.f32.mrb[4].mxu0 }
  0xe6   :  { %v336_v5 = vmul.f32 %v1105_v4, %v1364_v53  ;;  %v186_v6 = vpop.f32.mrb[5].mxu0  ;;  %1133 = vmatprep.mubr.msk.bf16.mxu0 %vm418_vm6, %v394_v3  ;;  %vm303_vm7 = vcmp.gt.f32.partialorder %v1105_v4, 0.0 }
  0xe7   :  { %v334_v7 = vmul.f32 %v1364_v53, %v186_v6  ;;  %v1106_v8 = vpop.f32.mrb[6].mxu0  ;;  %1134 = vmatmul.mubr.msk.bf16.vlgmr.msra.gmra.mrb[32].mxu0 %vm418_vm6, %v395_v1  ;;  %vm301_vm8 = vcmp.gt.f32.partialorder %v186_v6, 0.0 }
  0xe8   :  { %vm304_vm9 = vcmp.gt.f32.partialorder %v1106_v8, 0.0  ;;  %v337_v9 = vmul.f32 %v1106_v8, %v1364_v53  ;;  %v189_v10 = vpop.f32.mrb[7].mxu0  ;;  %v368_v12 = vsel %vm303_vm7, %v1105_v4, %v336_v5 }
  0xe9   :  { %vm302_vm10 = vcmp.gt.f32.partialorder %v189_v10, 0.0  ;;  %v335_v11 = vmul.f32 %v1364_v53, %v189_v10  ;;  %v366_v14 = vsel %vm301_vm8, %v186_v6, %v334_v7 }
  0xea   :  { %v369_v13 = vsel %vm304_vm9, %v1106_v8, %v337_v9 }
  0xeb   :  { %v397_v15 = vpack.c.bf16 %v369_v13, %v368_v12  ;;  %v367_v16 = vsel %vm302_vm10, %v189_v10, %v335_v11 }
  0xec   :  { %v396_v17 = vpack.c.bf16 %v367_v16, %v366_v14 }
  0xed   :  { %v1109_v18 = vpop.f32.mrb[8].mxu0 }
  0xee   :  { %v340_v19 = vmul.f32 %v1109_v18, %v1364_v53  ;;  %v202_v20 = vpop.f32.mrb[9].mxu0  ;;  %1137 = vmatprep.mubr.msk.bf16.mxu0 %vm418_vm6, %v396_v17  ;;  %vm307_vm11 = vcmp.gt.f32.partialorder %v1109_v18, 0.0 }
  0xef   :  { %v338_v21 = vmul.f32 %v1364_v53, %v202_v20  ;;  %v1110_v22 = vpop.f32.mrb[10].mxu0  ;;  %1138 = vmatmul.mubr.msk.bf16.gmra.mrb[36].mxu0 %vm418_vm6, %v397_v15  ;;  %vm305_vm12 = vcmp.gt.f32.partialorder %v202_v20, 0.0 }
  0xf0   :  { %vm308_vm13 = vcmp.gt.f32.partialorder %v1110_v22, 0.0  ;;  %v341_v23 = vmul.f32 %v1110_v22, %v1364_v53  ;;  %v205_v24 = vpop.f32.mrb[11].mxu0  ;;  %v372_v26 = vsel %vm307_vm11, %v1109_v18, %v340_v19 }
  0xf1   :  { %vm306_vm14 = vcmp.gt.f32.partialorder %v205_v24, 0.0  ;;  %v339_v25 = vmul.f32 %v1364_v53, %v205_v24  ;;  %v370_v28 = vsel %vm305_vm12, %v202_v20, %v338_v21 }
  0xf2   :  { %v373_v27 = vsel %vm308_vm13, %v1110_v22, %v341_v23 }
  0xf3   :  { %v399_v29 = vpack.c.bf16 %v373_v27, %v372_v26  ;;  %v371_v30 = vsel %vm306_vm14, %v205_v24, %v339_v25 }
  0xf4   :  { %v398_v31 = vpack.c.bf16 %v371_v30, %v370_v28 }
  0xf5   :  { %v1113_v32 = vpop.f32.mrb[12].mxu0 }
  0xf6   :  { %v344_v33 = vmul.f32 %v1113_v32, %v1364_v53  ;;  %v218_v34 = vpop.f32.mrb[13].mxu0  ;;  %1141 = vmatprep.mubr.msk.bf16.mxu0 %vm418_vm6, %v398_v31  ;;  %vm311_vm15 = vcmp.gt.f32.partialorder %v1113_v32, 0.0 }
  0xf7   :  { %v342_v35 = vmul.f32 %v1364_v53, %v218_v34  ;;  %v1114_v36 = vpop.f32.mrb[14].mxu0  ;;  %1142 = vmatmul.mubr.msk.bf16.gmra.mrb[40].mxu0 %vm418_vm6, %v399_v29  ;;  %vm309_vm0 = vcmp.gt.f32.partialorder %v218_v34, 0.0 }
  0xf8   :  { %vm312_vm1 = vcmp.gt.f32.partialorder %v1114_v36, 0.0  ;;  %v345_v37 = vmul.f32 %v1114_v36, %v1364_v53  ;;  %v221_v38 = vpop.f32.mrb[15].mxu0  ;;  %v376_v40 = vsel %vm311_vm15, %v1113_v32, %v344_v33 }
  0xf9   :  { %vm310_vm2 = vcmp.gt.f32.partialorder %v221_v38, 0.0  ;;  %v343_v39 = vmul.f32 %v1364_v53, %v221_v38  ;;  %v374_v43 = vsel %vm309_vm0, %v218_v34, %v342_v35 }
  0xfa   :  { %v377_v41 = vsel %vm312_vm1, %v1114_v36, %v345_v37 }
  0xfb   :  { %v401_v42 = vpack.c.bf16 %v377_v41, %v376_v40  ;;  %v375_v44 = vsel %vm310_vm2, %v221_v38, %v343_v39 }
  0xfc   :  { %v400_v45 = vpack.c.bf16 %v375_v44, %v374_v43 }
  0xfd   :  { %v1117_v46 = vpop.f32.mrb[16].mxu0 }
  0xfe   :  { %v348_v47 = vmul.f32 %v1117_v46, %v1364_v53  ;;  %v234_v48 = vpop.f32.mrb[17].mxu0  ;;  %1145 = vmatprep.mubr.msk.bf16.mxu1 %vm418_vm6, %v400_v45  ;;  %vm315_vm3 = vcmp.gt.f32.partialorder %v1117_v46, 0.0 }
  0xff   :  { %v346_v49 = vmul.f32 %v1364_v53, %v234_v48  ;;  %v1118_v50 = vpop.f32.mrb[18].mxu0  ;;  %1146 = vmatmul.mubr.msk.bf16.vlgmr.msra.gmra.mrb[0].mxu1 %vm418_vm6, %v401_v42  ;;  %vm313_vm4 = vcmp.gt.f32.partialorder %v234_v48, 0.0 }
 0x100   :  { %vm316_vm5 = vcmp.gt.f32.partialorder %v1118_v50, 0.0  ;;  %v349_v51 = vmul.f32 %v1118_v50, %v1364_v53  ;;  %v237_v54 = vpop.f32.mrb[19].mxu0  ;;  %1166 = vmatpush3.bf16.msra.mxu1 %v1359_v52  ;;  %v380_v56 = vsel %vm315_vm3, %v1117_v46, %v348_v47 }
 0x101   :  { %vm314_vm7 = vcmp.gt.f32.partialorder %v237_v54, 0.0  ;;  %v347_v55 = vmul.f32 %v1364_v53, %v237_v54  ;;  %v378_v58 = vsel %vm313_vm4, %v234_v48, %v346_v49 }
 0x102   :  { %v381_v57 = vsel %vm316_vm5, %v1118_v50, %v349_v51 }
 0x103   :  { %v403_v59 = vpack.c.bf16 %v381_v57, %v380_v56  ;;  %v379_v60 = vsel %vm314_vm7, %v237_v54, %v347_v55 }
 0x104   :  { %v402_v61 = vpack.c.bf16 %v379_v60, %v378_v58 }
 0x105   :  { %v1121_v62 = vpop.f32.mrb[20].mxu0 }
 0x106   :  { %v352_v63 = vmul.f32 %v1121_v62, %v1364_v53  ;;  %v250_v0 = vpop.f32.mrb[21].mxu0  ;;  %1149 = vmatprep.mubr.msk.bf16.mxu1 %vm418_vm6, %v402_v61  ;;  %vm319_vm8 = vcmp.gt.f32.partialorder %v1121_v62, 0.0 }
 0x107   :  { %v350_v1 = vmul.f32 %v1364_v53, %v250_v0  ;;  %v1122_v2 = vpop.f32.mrb[22].mxu0  ;;  %1150 = vmatmul.mubr.msk.bf16.gmra.mrb[4].mxu1 %vm418_vm6, %v403_v59  ;;  %vm317_vm9 = vcmp.gt.f32.partialorder %v250_v0, 0.0 }
 0x108   :  { %vm320_vm10 = vcmp.gt.f32.partialorder %v1122_v2, 0.0  ;;  %v353_v52 = vmul.f32 %v1122_v2, %v1364_v53  ;;  %v253_v3 = vpop.f32.mrb[23].mxu0  ;;  %v384_v5 = vsel %vm319_vm8, %v1121_v62, %v352_v63 }
 0x109   :  { %vm318_vm11 = vcmp.gt.f32.partialorder %v253_v3, 0.0  ;;  %v351_v4 = vmul.f32 %v1364_v53, %v253_v3  ;;  %v382_v7 = vsel %vm317_vm9, %v250_v0, %v350_v1 }
 0x10a   :  { %v385_v6 = vsel %vm320_vm10, %v1122_v2, %v353_v52 }
 0x10b   :  { %v405_v8 = vpack.c.bf16 %v385_v6, %v384_v5  ;;  %v383_v9 = vsel %vm318_vm11, %v253_v3, %v351_v4 }
 0x10c   :  { %v404_v10 = vpack.c.bf16 %v383_v9, %v382_v7 }
 0x10d   :  { %v1125_v11 = vpop.f32.mrb[24].mxu0 }
 0x10e   :  { %v356_v12 = vmul.f32 %v1125_v11, %v1364_v53  ;;  %v266_v13 = vpop.f32.mrb[25].mxu0  ;;  %1153 = vmatprep.mubr.msk.bf16.mxu1 %vm418_vm6, %v404_v10  ;;  %vm323_vm12 = vcmp.gt.f32.partialorder %v1125_v11, 0.0 }
 0x10f   :  { %v354_v14 = vmul.f32 %v1364_v53, %v266_v13  ;;  %v1126_v15 = vpop.f32.mrb[26].mxu0  ;;  %1154 = vmatmul.mubr.msk.bf16.gmra.mrb[8].mxu1 %vm418_vm6, %v405_v8  ;;  %vm321_vm13 = vcmp.gt.f32.partialorder %v266_v13, 0.0 }
 0x110   :  { %vm324_vm14 = vcmp.gt.f32.partialorder %v1126_v15, 0.0  ;;  %v357_v16 = vmul.f32 %v1126_v15, %v1364_v53  ;;  %v269_v17 = vpop.f32.mrb[27].mxu0  ;;  %v388_v19 = vsel %vm323_vm12, %v1125_v11, %v356_v12 }
 0x111   :  { %vm322_vm15 = vcmp.gt.f32.partialorder %v269_v17, 0.0  ;;  %v355_v18 = vmul.f32 %v1364_v53, %v269_v17  ;;  %v386_v21 = vsel %vm321_vm13, %v266_v13, %v354_v14 }
 0x112   :  { %v389_v20 = vsel %vm324_vm14, %v1126_v15, %v357_v16 }
 0x113   :  { %v407_v22 = vpack.c.bf16 %v389_v20, %v388_v19  ;;  %v387_v23 = vsel %vm322_vm15, %v269_v17, %v355_v18 }
 0x114   :  { %v406_v24 = vpack.c.bf16 %v387_v23, %v386_v21 }
 0x115   :  { %v1129_v25 = vpop.f32.mrb[28].mxu0 }
 0x116   :  { %v360_v26 = vmul.f32 %v1129_v25, %v1364_v53  ;;  %v282_v27 = vpop.f32.mrb[29].mxu0  ;;  %1157 = vmatprep.mubr.msk.bf16.mxu1 %vm418_vm6, %v406_v24  ;;  %vm327_vm0 = vcmp.gt.f32.partialorder %v1129_v25, 0.0 }
 0x117   :  { %v358_v28 = vmul.f32 %v1364_v53, %v282_v27  ;;  %v1130_v29 = vpop.f32.mrb[30].mxu0  ;;  %1158 = vmatmul.mubr.msk.bf16.gmra.mrb[12].mxu1 %vm418_vm6, %v407_v22  ;;  %vm325_vm1 = vcmp.gt.f32.partialorder %v282_v27, 0.0 }
 0x118   :  { %vm328_vm2 = vcmp.gt.f32.partialorder %v1130_v29, 0.0  ;;  %v361_v30 = vmul.f32 %v1130_v29, %v1364_v53  ;;  %v285_v31 = vpop.f32.mrb[31].mxu0  ;;  %v392_v33 = vsel %vm327_vm0, %v1129_v25, %v360_v26 }
 0x119   :  { %vm326_vm3 = vcmp.gt.f32.partialorder %v285_v31, 0.0  ;;  %v359_v32 = vmul.f32 %v1364_v53, %v285_v31  ;;  %v390_v35 = vsel %vm325_vm1, %v282_v27, %v358_v28 }
 0x11a   :  { %v393_v34 = vsel %vm328_vm2, %v1130_v29, %v361_v30 }
 0x11b   :  { %v409_v36 = vpack.c.bf16 %v393_v34, %v392_v33  ;;  %v391_v37 = vsel %vm326_vm3, %v285_v31, %v359_v32 }
 0x11c   :  { %v408_v38 = vpack.c.bf16 %v391_v37, %v390_v35 }
 0x11e   :  { %1161 = vmatprep.mubr.msk.bf16.mxu1 %vm418_vm6, %v408_v38 }
 0x11f   :  { %1162 = vmatmul.mubr.msk.bf16.gmra.mrb[16].mxu1 %vm418_vm6, %v409_v36  ;;  %vm741_vm6 = vcmask 64512  }
 0x1ba   :  { %v1135_v39 = vpop.f32.mrb[32].mxu0 }
 0x1bb   :  { %v662_v40 = vmul.f32 %v1135_v39, %v1364_v53  ;;  %v501_v41 = vpop.f32.mrb[33].mxu0  ;;  %vm630_vm4 = vcmp.gt.f32.partialorder %v1135_v39, 0.0 }
 0x1bc   :  { %v660_v42 = vmul.f32 %v501_v41, %v1364_v53  ;;  %v1136_v43 = vpop.f32.mrb[34].mxu0  ;;  %vm628_vm5 = vcmp.gt.f32.partialorder %v501_v41, 0.0 }
 0x1bd   :  { %vm631_vm7 = vcmp.gt.f32.partialorder %v1136_v43, 0.0  ;;  %v663_v44 = vmul.f32 %v1136_v43, %v1364_v53  ;;  %v504_v45 = vpop.f32.mrb[35].mxu0  ;;  %v694_v47 = vsel %vm630_vm4, %v1135_v39, %v662_v40 }
 0x1be   :  { %vm629_vm8 = vcmp.gt.f32.partialorder %v504_v45, 0.0  ;;  %v661_v46 = vmul.f32 %v504_v45, %v1364_v53  ;;  %v692_v49 = vsel %vm628_vm5, %v501_v41, %v660_v42 }
 0x1bf   :  { %v695_v48 = vsel %vm631_vm7, %v1136_v43, %v663_v44 }
 0x1c0   :  { %v725_v50 = vpack.c.bf16 %v695_v48, %v694_v47  ;;  %v693_v51 = vsel %vm629_vm8, %v504_v45, %v661_v46 }
 0x1c1   :  { %v724_v54 = vpack.c.bf16 %v693_v51, %v692_v49 }
 0x1c2   :  { %v1139_v55 = vpop.f32.mrb[36].mxu0 }
 0x1c3   :  { %v666_v56 = vmul.f32 %v1139_v55, %v1364_v53  ;;  %v517_v57 = vpop.f32.mrb[37].mxu0  ;;  %1167 = vmatprep.mubr.msk.bf16.mxu1 %vm741_vm6, %v724_v54  ;;  %vm634_vm9 = vcmp.gt.f32.partialorder %v1139_v55, 0.0 }
 0x1c4   :  { %v664_v58 = vmul.f32 %v517_v57, %v1364_v53  ;;  %v1140_v59 = vpop.f32.mrb[38].mxu0  ;;  %1168 = vmatmul.mubr.msk.bf16.vlgmr.msra.gmra.mrb[20].mxu1 %vm741_vm6, %v725_v50  ;;  %vm632_vm10 = vcmp.gt.f32.partialorder %v517_v57, 0.0 }
 0x1c5   :  { %vm635_vm11 = vcmp.gt.f32.partialorder %v1140_v59, 0.0  ;;  %v667_v60 = vmul.f32 %v1140_v59, %v1364_v53  ;;  %v520_v61 = vpop.f32.mrb[39].mxu0  ;;  %v698_v63 = vsel %vm634_vm9, %v1139_v55, %v666_v56 }
 0x1c6   :  { %vm633_vm12 = vcmp.gt.f32.partialorder %v520_v61, 0.0  ;;  %v665_v62 = vmul.f32 %v520_v61, %v1364_v53  ;;  %v696_v1 = vsel %vm632_vm10, %v517_v57, %v664_v58 }
 0x1c7   :  { %v699_v0 = vsel %vm635_vm11, %v1140_v59, %v667_v60 }
 0x1c8   :  { %v727_v2 = vpack.c.bf16 %v699_v0, %v698_v63  ;;  %v697_v52 = vsel %vm633_vm12, %v520_v61, %v665_v62 }
 0x1c9   :  { %v726_v3 = vpack.c.bf16 %v697_v52, %v696_v1 }
 0x1ca   :  { %v1143_v4 = vpop.f32.mrb[40].mxu0 }
 0x1cb   :  { %v670_v5 = vmul.f32 %v1143_v4, %v1364_v53  ;;  %v533_v6 = vpop.f32.mrb[41].mxu0  ;;  %1171 = vmatprep.mubr.msk.bf16.mxu1 %vm741_vm6, %v726_v3  ;;  %vm638_vm13 = vcmp.gt.f32.partialorder %v1143_v4, 0.0 }
 0x1cc   :  { %v668_v7 = vmul.f32 %v533_v6, %v1364_v53  ;;  %v1144_v8 = vpop.f32.mrb[42].mxu0  ;;  %1172 = vmatmul.mubr.msk.bf16.gmra.mrb[24].mxu1 %vm741_vm6, %v727_v2  ;;  %vm636_vm14 = vcmp.gt.f32.partialorder %v533_v6, 0.0 }
 0x1cd   :  { %vm639_vm15 = vcmp.gt.f32.partialorder %v1144_v8, 0.0  ;;  %v671_v9 = vmul.f32 %v1144_v8, %v1364_v53  ;;  %v536_v10 = vpop.f32.mrb[43].mxu0  ;;  %v702_v12 = vsel %vm638_vm13, %v1143_v4, %v670_v5 }
 0x1ce   :  { %vm637_vm0 = vcmp.gt.f32.partialorder %v536_v10, 0.0  ;;  %v669_v11 = vmul.f32 %v536_v10, %v1364_v53  ;;  %v700_v14 = vsel %vm636_vm14, %v533_v6, %v668_v7 }
 0x1cf   :  { %v703_v13 = vsel %vm639_vm15, %v1144_v8, %v671_v9 }
 0x1d0   :  { %v729_v15 = vpack.c.bf16 %v703_v13, %v702_v12  ;;  %v701_v16 = vsel %vm637_vm0, %v536_v10, %v669_v11 }
 0x1d1   :  { %v728_v17 = vpack.c.bf16 %v701_v16, %v700_v14 }
 0x1d2   :  { %v1147_v18 = vpop.f32.mrb[0].mxu1 }
 0x1d3   :  { %v674_v19 = vmul.f32 %v1147_v18, %v1364_v53  ;;  %v549_v20 = vpop.f32.mrb[1].mxu1  ;;  %1175 = vmatprep.mubr.msk.bf16.mxu1 %vm741_vm6, %v728_v17  ;;  %vm642_vm1 = vcmp.gt.f32.partialorder %v1147_v18, 0.0 }
 0x1d4   :  { %v672_v21 = vmul.f32 %v549_v20, %v1364_v53  ;;  %v1148_v22 = vpop.f32.mrb[2].mxu1  ;;  %1176 = vmatmul.mubr.msk.bf16.gmra.mrb[28].mxu1 %vm741_vm6, %v729_v15  ;;  %vm640_vm2 = vcmp.gt.f32.partialorder %v549_v20, 0.0 }
 0x1d5   :  { %vm643_vm3 = vcmp.gt.f32.partialorder %v1148_v22, 0.0  ;;  %v675_v23 = vmul.f32 %v1148_v22, %v1364_v53  ;;  %v552_v24 = vpop.f32.mrb[3].mxu1  ;;  %v706_v26 = vsel %vm642_vm1, %v1147_v18, %v674_v19 }
 0x1d6   :  { %vm641_vm4 = vcmp.gt.f32.partialorder %v552_v24, 0.0  ;;  %v673_v25 = vmul.f32 %v552_v24, %v1364_v53  ;;  %v704_v28 = vsel %vm640_vm2, %v549_v20, %v672_v21 }
 0x1d7   :  { %v707_v27 = vsel %vm643_vm3, %v1148_v22, %v675_v23 }
 0x1d8   :  { %v731_v29 = vpack.c.bf16 %v707_v27, %v706_v26  ;;  %v705_v30 = vsel %vm641_vm4, %v552_v24, %v673_v25 }
 0x1d9   :  { %v730_v31 = vpack.c.bf16 %v705_v30, %v704_v28 }
 0x1da   :  { %v1151_v32 = vpop.f32.mrb[4].mxu1 }
 0x1db   :  { %v678_v33 = vmul.f32 %v1151_v32, %v1364_v53  ;;  %v565_v34 = vpop.f32.mrb[5].mxu1  ;;  %1179 = vmatprep.mubr.msk.bf16.mxu1 %vm741_vm6, %v730_v31  ;;  %vm646_vm5 = vcmp.gt.f32.partialorder %v1151_v32, 0.0 }
 0x1dc   :  { %v676_v35 = vmul.f32 %v565_v34, %v1364_v53  ;;  %v1152_v36 = vpop.f32.mrb[6].mxu1  ;;  %1180 = vmatmul.mubr.msk.bf16.gmra.mrb[32].mxu1 %vm741_vm6, %v731_v29  ;;  %vm644_vm7 = vcmp.gt.f32.partialorder %v565_v34, 0.0 }
 0x1dd   :  { %vm647_vm8 = vcmp.gt.f32.partialorder %v1152_v36, 0.0  ;;  %v679_v37 = vmul.f32 %v1152_v36, %v1364_v53  ;;  %v568_v38 = vpop.f32.mrb[7].mxu1  ;;  %v710_v40 = vsel %vm646_vm5, %v1151_v32, %v678_v33 }
 0x1de   :  { %vm645_vm9 = vcmp.gt.f32.partialorder %v568_v38, 0.0  ;;  %v677_v39 = vmul.f32 %v568_v38, %v1364_v53  ;;  %v708_v42 = vsel %vm644_vm7, %v565_v34, %v676_v35  ;;  %vm955_vm7 = vcmask 80896  }
 0x1df   :  { %v711_v41 = vsel %vm647_vm8, %v1152_v36, %v679_v37 }
 0x1e0   :  { %v733_v43 = vpack.c.bf16 %v711_v41, %v710_v40  ;;  %v709_v44 = vsel %vm645_vm9, %v568_v38, %v677_v39 }
 0x1e1   :  { %v732_v45 = vpack.c.bf16 %v709_v44, %v708_v42 }
 0x1e2   :  { %v1155_v46 = vpop.f32.mrb[8].mxu1 }
 0x1e3   :  { %v682_v47 = vmul.f32 %v1155_v46, %v1364_v53  ;;  %v581_v48 = vpop.f32.mrb[9].mxu1  ;;  %1183 = vmatprep.mubr.msk.bf16.mxu1 %vm741_vm6, %v732_v45  ;;  %vm650_vm10 = vcmp.gt.f32.partialorder %v1155_v46, 0.0 }
 0x1e4   :  { %v680_v49 = vmul.f32 %v581_v48, %v1364_v53  ;;  %v1156_v50 = vpop.f32.mrb[10].mxu1  ;;  %1184 = vmatmul.mubr.msk.bf16.gmra.mrb[36].mxu1 %vm741_vm6, %v733_v43  ;;  %vm648_vm11 = vcmp.gt.f32.partialorder %v581_v48, 0.0 }
 0x1e5   :  { %vm651_vm12 = vcmp.gt.f32.partialorder %v1156_v50, 0.0  ;;  %v683_v51 = vmul.f32 %v1156_v50, %v1364_v53  ;;  %v584_v54 = vpop.f32.mrb[11].mxu1  ;;  %v714_v56 = vsel %vm650_vm10, %v1155_v46, %v682_v47 }
 0x1e6   :  { %vm649_vm13 = vcmp.gt.f32.partialorder %v584_v54, 0.0  ;;  %v681_v55 = vmul.f32 %v584_v54, %v1364_v53  ;;  %v712_v58 = vsel %vm648_vm11, %v581_v48, %v680_v49 }
 0x1e7   :  { %v715_v57 = vsel %vm651_vm12, %v1156_v50, %v683_v51 }
 0x1e8   :  { %v735_v59 = vpack.c.bf16 %v715_v57, %v714_v56  ;;  %v713_v60 = vsel %vm649_vm13, %v584_v54, %v681_v55 }
 0x1e9   :  { %v734_v61 = vpack.c.bf16 %v713_v60, %v712_v58 }
 0x1ea   :  { %v1159_v62 = vpop.f32.mrb[12].mxu1 }
 0x1eb   :  { %v686_v63 = vmul.f32 %v1159_v62, %v1364_v53  ;;  %v597_v0 = vpop.f32.mrb[13].mxu1  ;;  %1187 = vmatprep.mubr.msk.bf16.mxu1 %vm741_vm6, %v734_v61  ;;  %vm654_vm14 = vcmp.gt.f32.partialorder %v1159_v62, 0.0 }
 0x1ec   :  { %v684_v1 = vmul.f32 %v597_v0, %v1364_v53  ;;  %v1160_v2 = vpop.f32.mrb[14].mxu1  ;;  %1188 = vmatmul.mubr.msk.bf16.gmra.mrb[40].mxu1 %vm741_vm6, %v735_v59  ;;  %vm652_vm15 = vcmp.gt.f32.partialorder %v597_v0, 0.0 }
 0x1ed   :  { %vm655_vm0 = vcmp.gt.f32.partialorder %v1160_v2, 0.0  ;;  %v687_v52 = vmul.f32 %v1160_v2, %v1364_v53  ;;  %v600_v3 = vpop.f32.mrb[15].mxu1  ;;  %v718_v5 = vsel %vm654_vm14, %v1159_v62, %v686_v63 }
 0x1ee   :  { %vm653_vm1 = vcmp.gt.f32.partialorder %v600_v3, 0.0  ;;  %v685_v4 = vmul.f32 %v600_v3, %v1364_v53  ;;  %v716_v7 = vsel %vm652_vm15, %v597_v0, %v684_v1 }
 0x1ef   :  { %v719_v6 = vsel %vm655_vm0, %v1160_v2, %v687_v52 }
 0x1f0   :  { %v737_v8 = vpack.c.bf16 %v719_v6, %v718_v5  ;;  %v717_v9 = vsel %vm653_vm1, %v600_v3, %v685_v4 }
 0x1f1   :  { %v736_v10 = vpack.c.bf16 %v717_v9, %v716_v7 }
 0x1f2   :  { %v1163_v11 = vpop.f32.mrb[16].mxu1 }
 0x1f3   :  { %v690_v12 = vmul.f32 %v1163_v11, %v1364_v53  ;;  %v613_v13 = vpop.f32.mrb[17].mxu1  ;;  %1191 = vmatprep.mubr.msk.bf16.mxu1 %vm741_vm6, %v736_v10  ;;  %vm658_vm2 = vcmp.gt.f32.partialorder %v1163_v11, 0.0 }
 0x1f4   :  { %v688_v14 = vmul.f32 %v613_v13, %v1364_v53  ;;  %v1164_v15 = vpop.f32.mrb[18].mxu1  ;;  %1192 = vmatmul.mubr.msk.bf16.gmra.mrb[44].mxu1 %vm741_vm6, %v737_v8  ;;  %vm656_vm3 = vcmp.gt.f32.partialorder %v613_v13, 0.0 }
 0x1f5   :  { %vm659_vm4 = vcmp.gt.f32.partialorder %v1164_v15, 0.0  ;;  %v691_v16 = vmul.f32 %v1164_v15, %v1364_v53  ;;  %v616_v17 = vpop.f32.mrb[19].mxu1  ;;  %v722_v19 = vsel %vm658_vm2, %v1163_v11, %v690_v12 }
 0x1f6   :  { %vm657_vm5 = vcmp.gt.f32.partialorder %v616_v17, 0.0  ;;  %v689_v18 = vmul.f32 %v616_v17, %v1364_v53  ;;  %v720_v21 = vsel %vm656_vm3, %v613_v13, %v688_v14 }
 0x1f7   :  { %v723_v20 = vsel %vm659_vm4, %v1164_v15, %v691_v16 }
 0x1f8   :  { %v739_v22 = vpack.c.bf16 %v723_v20, %v722_v19  ;;  %v721_v23 = vsel %vm657_vm5, %v616_v17, %v689_v18 }
 0x1f9   :  { %v738_v24 = vpack.c.bf16 %v721_v23, %v720_v21 }
 0x1fb   :  { %1195 = vmatprep.mubr.msk.bf16.mxu1 %vm741_vm6, %v738_v24 }
 0x1fc   :  { %1196 = vmatmul.mubr.msk.bf16.gmra.mrb[48].mxu1 %vm741_vm6, %v739_v22 }
 0x297   :  { %v1169_v25 = vpop.f32.mrb[20].mxu1 }
 0x298   :  { %958 = vst.msk [vmem:[%s1596_s5 + $0x10] sm:$0xff] %vm955_vm7, %v1169_v25  ;;  %v828_v26 = vpop.f32.mrb[21].mxu1 }
 0x299   :  { %956 = vst.msk [vmem:[%s1596_s5] sm:$0xff] %vm955_vm7, %v828_v26  ;;  %v1170_v53 = vpop.f32.mrb[22].mxu1 }
 0x29a   :  { %959 = vst.msk [vmem:[%s1596_s5 + $0x18] sm:$0xff] %vm955_vm7, %v1170_v53  ;;  %v831_v27 = vpop.f32.mrb[23].mxu1 }
 0x29b   :  { %957 = vst.msk [vmem:[%s1596_s5 + $0x8] sm:$0xff] %vm955_vm7, %v831_v27 }
 0x29f   :  { %v1173_v28 = vpop.f32.mrb[24].mxu1 }
 0x2a0   :  { %962 = vst.msk [vmem:[%s1596_s5 + $0x30] sm:$0xff] %vm955_vm7, %v1173_v28  ;;  %v844_v29 = vpop.f32.mrb[25].mxu1 }
 0x2a1   :  { %960 = vst.msk [vmem:[%s1596_s5 + $0x20] sm:$0xff] %vm955_vm7, %v844_v29  ;;  %v1174_v30 = vpop.f32.mrb[26].mxu1 }
 0x2a2   :  { %963 = vst.msk [vmem:[%s1596_s5 + $0x38] sm:$0xff] %vm955_vm7, %v1174_v30  ;;  %v847_v31 = vpop.f32.mrb[27].mxu1 }
 0x2a3   :  { %961 = vst.msk [vmem:[%s1596_s5 + $0x28] sm:$0xff] %vm955_vm7, %v847_v31 }
 0x2a7   :  { %v1177_v32 = vpop.f32.mrb[28].mxu1 }
 0x2a8   :  { %966 = vst.msk [vmem:[%s1596_s5 + $0x50] sm:$0xff] %vm955_vm7, %v1177_v32  ;;  %v860_v33 = vpop.f32.mrb[29].mxu1 }
 0x2a9   :  { %964 = vst.msk [vmem:[%s1596_s5 + $0x40] sm:$0xff] %vm955_vm7, %v860_v33  ;;  %v1178_v34 = vpop.f32.mrb[30].mxu1 }
 0x2aa   :  { %967 = vst.msk [vmem:[%s1596_s5 + $0x58] sm:$0xff] %vm955_vm7, %v1178_v34  ;;  %v863_v35 = vpop.f32.mrb[31].mxu1 }
 0x2ab   :  { %965 = vst.msk [vmem:[%s1596_s5 + $0x48] sm:$0xff] %vm955_vm7, %v863_v35 }
 0x2af   :  { %v1181_v36 = vpop.f32.mrb[32].mxu1 }
 0x2b0   :  { %970 = vst.msk [vmem:[%s1596_s5 + $0x70] sm:$0xff] %vm955_vm7, %v1181_v36  ;;  %v876_v37 = vpop.f32.mrb[33].mxu1 }
 0x2b1   :  { %968 = vst.msk [vmem:[%s1596_s5 + $0x60] sm:$0xff] %vm955_vm7, %v876_v37  ;;  %v1182_v38 = vpop.f32.mrb[34].mxu1 }
 0x2b2   :  { %971 = vst.msk [vmem:[%s1596_s5 + $0x78] sm:$0xff] %vm955_vm7, %v1182_v38  ;;  %v879_v39 = vpop.f32.mrb[35].mxu1 }
 0x2b3   :  { %969 = vst.msk [vmem:[%s1596_s5 + $0x68] sm:$0xff] %vm955_vm7, %v879_v39 }
 0x2b7   :  { %v1185_v40 = vpop.f32.mrb[36].mxu1 }
 0x2b8   :  { %974 = vst.msk [vmem:[%s1596_s5 + $0x90] sm:$0xff] %vm955_vm7, %v1185_v40  ;;  %v892_v41 = vpop.f32.mrb[37].mxu1 }
 0x2b9   :  { %972 = vst.msk [vmem:[%s1596_s5 + $0x80] sm:$0xff] %vm955_vm7, %v892_v41  ;;  %v1186_v42 = vpop.f32.mrb[38].mxu1 }
 0x2ba   :  { %975 = vst.msk [vmem:[%s1596_s5 + $0x98] sm:$0xff] %vm955_vm7, %v1186_v42  ;;  %v895_v43 = vpop.f32.mrb[39].mxu1 }
 0x2bb   :  { %973 = vst.msk [vmem:[%s1596_s5 + $0x88] sm:$0xff] %vm955_vm7, %v895_v43 }
 0x2bf   :  { %v1189_v44 = vpop.f32.mrb[40].mxu1 }
 0x2c0   :  { %978 = vst.msk [vmem:[%s1596_s5 + $0xb0] sm:$0xff] %vm955_vm7, %v1189_v44  ;;  %v908_v45 = vpop.f32.mrb[41].mxu1 }
 0x2c1   :  { %976 = vst.msk [vmem:[%s1596_s5 + $0xa0] sm:$0xff] %vm955_vm7, %v908_v45  ;;  %v1190_v46 = vpop.f32.mrb[42].mxu1 }
 0x2c2   :  { %979 = vst.msk [vmem:[%s1596_s5 + $0xb8] sm:$0xff] %vm955_vm7, %v1190_v46  ;;  %v911_v47 = vpop.f32.mrb[43].mxu1 }
 0x2c3   :  { %977 = vst.msk [vmem:[%s1596_s5 + $0xa8] sm:$0xff] %vm955_vm7, %v911_v47 }
 0x2c7   :  { %v1193_v48 = vpop.f32.mrb[44].mxu1 }
 0x2c8   :  { %982 = vst.msk [vmem:[%s1596_s5 + $0xd0] sm:$0xff] %vm955_vm7, %v1193_v48  ;;  %v924_v49 = vpop.f32.mrb[45].mxu1 }
 0x2c9   :  { %980 = vst.msk [vmem:[%s1596_s5 + $0xc0] sm:$0xff] %vm955_vm7, %v924_v49  ;;  %v1194_v50 = vpop.f32.mrb[46].mxu1 }
 0x2ca   :  { %983 = vst.msk [vmem:[%s1596_s5 + $0xd8] sm:$0xff] %vm955_vm7, %v1194_v50  ;;  %v927_v51 = vpop.f32.mrb[47].mxu1 }
 0x2cb   :  { %981 = vst.msk [vmem:[%s1596_s5 + $0xc8] sm:$0xff] %vm955_vm7, %v927_v51 }
 0x2cf   :  { %v1197_v54 = vpop.f32.mrb[48].mxu1 }
 0x2d0   :  { %986 = vst.msk [vmem:[%s1596_s5 + $0xf0] sm:$0xff] %vm955_vm7, %v1197_v54  ;;  %v940_v55 = vpop.f32.mrb[49].mxu1 }
 0x2d1   :  { %984 = vst.msk [vmem:[%s1596_s5 + $0xe0] sm:$0xff] %vm955_vm7, %v940_v55  ;;  %v1198_v56 = vpop.f32.mrb[50].mxu1 }
 0x2d2   :  { %987 = vst.msk [vmem:[%s1596_s5 + $0xf8] sm:$0xff] %vm955_vm7, %v1198_v56  ;;  %v943_v57 = vpop.f32.mrb[51].mxu1 }
 0x2d3   :  { %985 = vst.msk [vmem:[%s1596_s5 + $0xe8] sm:$0xff] %vm955_vm7, %v943_v57 }

</bundles_post_ra>
